<compile_context>
chip_gen: v5e
topology: v5e:2x2
jax: 0.10.0
libtpu: 0.0.40
codegen_flags: <defaults>
</compile_context>

<pallas_src>
import numpy as np
import jax
import jax.numpy as jnp
from jax.experimental import pallas as pl
from jax.experimental.pallas import tpu as pltpu


def _linear_interp_matrix(out_size, in_size):
    """1-D linear interpolation matrix, align_corners=True."""
    M = np.zeros((out_size, in_size), dtype=np.float32)
    if in_size == 1 or out_size == 1:
        M[:, 0] = 1.0
        return M
    for o in range(out_size):
        pos = o * (in_size - 1) / (out_size - 1)
        lo = int(np.floor(pos))
        hi = min(lo + 1, in_size - 1)
        w = pos - lo
        M[o, lo] += 1.0 - w
        M[o, hi] += w
    return M


def make_params(key, in_c, out_c, size):
    D, H, W = size
    # ceil division so the interp matrices match x[:, :, ::2, ::2, ::2] even
    # for odd spatial sizes.
    D2, H2, W2 = (D + 1) // 2, (H + 1) // 2, (W + 1) // 2
    k1, k2, k3 = jax.random.split(key, 3)

    # raw module parameters (guessed DualDomainNet, see TODO above)
    w1_t = np.asarray(jax.random.normal(k1, (out_c, in_c), jnp.float32)) * 0.1
    wc_t = np.asarray(jax.random.normal(k2, (out_c, out_c), jnp.float32)) * 0.1
    ws = np.asarray(jax.random.normal(k3, (out_c,), jnp.float32)) * 0.1
    b1 = np.zeros((out_c,), np.float32)
    bc = np.zeros((out_c,), np.float32)
    bs = np.float32(0.0)

    Md = _linear_interp_matrix(D, D2)
    Mh = _linear_interp_matrix(H, H2)
    Mw = _linear_interp_matrix(W, W2)

    I_c = np.eye(out_c, dtype=np.float32)
    I_d2 = np.eye(D2, dtype=np.float32)

    # ---- kernel operands, all in the (channel*depth rows, (h,w) lanes) layout ----
    # stride-2 1x1x1 conv expressed in that layout
    w1k = np.kron(w1_t, I_d2)                                        # (Cout*D2, Cin*D2)
    b1_rows = np.repeat(b1, D2)[:, None]                             # (Cout*D2, 1)
    # channel attention: global-average-pool + dense, folded into one matrix
    pool_c = np.kron(I_c, np.ones((1, D2), np.float32) / D2)         # (Cout, Cout*D2)
    wc_pool = wc_t @ pool_c                                          # (Cout, Cout*D2)
    ec = np.kron(I_c, np.ones((D2, 1), np.float32))                  # (Cout*D2, Cout)  a_c -> rows
    # spatial attention: per-voxel channel reduction grouped by depth row-block
    ps = np.kron(ws[None, :], I_d2)                                  # (D2, Cout*D2)
    es = np.kron(np.ones((out_c, 1), np.float32), I_d2)              # (Cout*D2, D2)    a_s -> rows
    # separable trilinear upsample (align_corners=True)
    up_d = np.kron(I_c, Md)                                          # (Cout*D, Cout*D2)
    mhw_t = np.kron(Mh, Mw).T                                        # (H2*W2, H*W)

    aux_rows = np.concatenate([w1k, ec, es, b1_rows], axis=1)        # (Cout*D2, Cin*D2+Cout+D2+1)
    aux_c = np.concatenate([wc_pool, bc[:, None]], axis=1)           # (Cout, Cout*D2+1)
    aux_s = np.concatenate([ps, np.full((D2, 1), bs, np.float32)], axis=1)  # (D2, Cout*D2+1)

    return {
        "aux_rows": jnp.asarray(aux_rows, jnp.float32),
        "aux_c": jnp.asarray(aux_c, jnp.float32),
        "aux_s": jnp.asarray(aux_s, jnp.float32),
        "up_d": jnp.asarray(up_d, jnp.bfloat16),
        "mhw_t": jnp.asarray(mhw_t, jnp.bfloat16),
        "meta": (in_c, out_c, D, H, W),
        # raw params kept only for the pure-JAX reference check
        "ref": dict(w1_t=w1_t, wc_t=wc_t, ws=ws, b1=b1, bc=bc, bs=bs,
                    Md=Md, Mh=Mh, Mw=Mw),
    }


def attention_forward(x, params, *, max_tile_hw=2048):
    """x: (N, Cin, D, H, W) float32  ->  (N, Cout, D, H, W) float32."""
    N, Cin, D, H, W = x.shape
    in_c, out_c, D_p, H_p, W_p = params["meta"]
    assert (Cin, D, H, W) == (in_c, D_p, H_p, W_p)
    D2, H2, W2 = (D + 1) // 2, (H + 1) // 2, (W + 1) // 2
    shw2 = H2 * W2
    hw = H * W
    cind2 = Cin * D2
    coutd2 = out_c * D2
    coutd = out_c * D

    aux_rows, aux_c, aux_s = params["aux_rows"], params["aux_c"], params["aux_s"]
    up_d, mhw_t = params["up_d"], params["mhw_t"]
    assert aux_rows.shape == (coutd2, cind2 + out_c + D2 + 1)
    assert up_d.shape == (coutd, coutd2) and mhw_t.shape == (shw2, hw)

    # stride-2 1x1x1 conv == subsample (wrapper) + matmul (in kernel).
    x_ds = x[:, :, ::2, ::2, ::2]
    x2 = x_ds.reshape(N, cind2, shw2)          # free reshape, channels stay leading

    # Tile the (H, W) output lanes only when a multiple-of-128 divisor exists.
    # The single-tile fallback is always safe now: mhw_t is at most (H2*W2, H*W).
    tile_hw, num_hw = hw, 1
    cand = (min(max_tile_hw, hw) // 128) * 128
    while cand >= 128:
        if hw % cand == 0:
            tile_hw, num_hw = cand, hw // cand
            break
        cand -= 128

    # Generation-aware VMEM budget (v7x: 64 MiB/TC, v5e/v6e: 128 MiB).
    try:
        vmem_cap = int(pltpu.get_tpu_info().vmem_capacity_bytes)
    except Exception:
        vmem_cap = 64 * 1024 * 1024
    vmem_limit = min((vmem_cap * 3) // 4, 112 * 1024 * 1024)

    c0 = cind2
    c1 = c0 + out_c
    c2 = c1 + D2
    c3 = c2 + 1

    def kernel(x_ref, auxr_ref, auxc_ref, auxs_ref, upd_ref, mhw_ref, o_ref):
        x_blk = x_ref[0].astype(jnp.bfloat16)            # (Cin*D2, H2*W2)
        auxr = auxr_ref[...]
        w1k = auxr[:, 0:c0].astype(jnp.bfloat16)         # (Cout*D2, Cin*D2)
        ec = auxr[:, c0:c1]                              # (Cout*D2, Cout)
        es = auxr[:, c1:c2]                              # (Cout*D2, D2)
        b1 = auxr[:, c2:c3]                              # (Cout*D2, 1)
        auxc = auxc_ref[...]
        wc_pool = auxc[:, 0:coutd2]                      # (Cout, Cout*D2)
        bc = auxc[:, coutd2:coutd2 + 1]                  # (Cout, 1)
        auxs = auxs_ref[...]
        ps = auxs[:, 0:coutd2]                           # (D2, Cout*D2)
        bs = auxs[0:1, coutd2:coutd2 + 1]                # (1, 1)

        # stride-2 1x1x1 conv + ReLU (single-pass bf16 MXU, f32 accumulation)
        feat = jnp.dot(w1k, x_blk, preferred_element_type=jnp.float32)
        feat = jnp.maximum(feat + b1, 0.0)               # (Cout*D2, H2*W2)

        # channel attention: reduce first, then tiny dense (perf-review reorder)
        rowmean = jnp.mean(feat, axis=1, keepdims=True)                        # (Cout*D2, 1)
        a_c = jax.nn.sigmoid(
            jnp.dot(wc_pool, rowmean, preferred_element_type=jnp.float32) + bc)    # (Cout, 1)
        a_c_rows = jnp.dot(ec, a_c, preferred_element_type=jnp.float32)        # (Cout*D2, 1)

        # spatial attention on the downsampled grid
        a_s = jax.nn.sigmoid(
            jnp.dot(ps, feat, preferred_element_type=jnp.float32) + bs)        # (D2, H2*W2)
        a_s_rows = jnp.dot(es, a_s, preferred_element_type=jnp.float32)        # (Cout*D2, H2*W2)

        # dual-domain gating
        y = (feat * a_c_rows * a_s_rows).astype(jnp.bfloat16)                  # (Cout*D2, H2*W2)

        # separable trilinear upsample: depth axis, then the (H, W) tile
        t = jnp.dot(upd_ref[...], y,
                    preferred_element_type=jnp.float32).astype(jnp.bfloat16)   # (Cout*D, H2*W2)
        o_ref[0] = jnp.dot(t, mhw_ref[...],
                           preferred_element_type=jnp.float32)                 # (Cout*D, tile_hw)

    out = pl.pallas_call(
        kernel,
        out_shape=jax.ShapeDtypeStruct((N, coutd, hw), jnp.float32),
        grid_spec=pltpu.PrefetchScalarGridSpec(
            num_scalar_prefetch=0,
            # hw-tile axis outermost so the mhw_t tile is not re-streamed per
            # batch item; both axes parallel (>=2 blocks -> both v7x TCs busy).
            grid=(num_hw, N),
            in_specs=[
                pl.BlockSpec((1, cind2, shw2), lambda s, n: (n, 0, 0)),        # x (subsampled)
                pl.BlockSpec(aux_rows.shape, lambda s, n: (0, 0)),             # packed row params
                pl.BlockSpec(aux_c.shape, lambda s, n: (0, 0)),                # packed chan-attn
                pl.BlockSpec(aux_s.shape, lambda s, n: (0, 0)),                # packed spat-attn
                pl.BlockSpec(up_d.shape, lambda s, n: (0, 0)),                 # depth upsample
                pl.BlockSpec((shw2, tile_hw), lambda s, n: (0, s)),            # (H,W) upsample tile
            ],
            out_specs=pl.BlockSpec((1, coutd, tile_hw), lambda s, n: (n, 0, s)),
        ),
        compiler_params=pltpu.CompilerParams(
            dimension_semantics=("parallel", "parallel"),
            vmem_limit_bytes=int(vmem_limit),
        ),
    )(x2, aux_rows, aux_c, aux_s, up_d, mhw_t)

    # (N, Cout*D, H*W) is already NCDHW flattened -> free reshape, no transpose.
    return out.reshape(N, out_c, D, H, W)


def _reference(x, ref):
    """Pure-JAX f32 reference of the same (guessed) module, for validation."""
    w1_t, wc_t, ws = ref["w1_t"], ref["wc_t"], ref["ws"]
    b1, bc, bs = ref["b1"], ref["bc"], ref["bs"]
    Md, Mh, Mw = ref["Md"], ref["Mh"], ref["Mw"]
    xd = x[:, :, ::2, ::2, ::2]
    feat = jnp.einsum("oc,ncdhw->nodhw", w1_t, xd) + b1[None, :, None, None, None]
    feat = jnp.maximum(feat, 0.0)
    gap = feat.mean(axis=(2, 3, 4))                                    # (N, Cout)
    a_c = jax.nn.sigmoid(gap @ wc_t.T + bc[None, :])                   # (N, Cout)
    a_s = jax.nn.sigmoid(jnp.einsum("o,nodhw->ndhw", ws, feat) + bs)   # (N, D2, H2, W2)
    y = feat * a_c[:, :, None, None, None] * a_s[:, None]
    return jnp.einsum("nodhw,ad,bh,cw->noabc", y, Md, Mh, Mw)


if __name__ == "__main__":
    N, in_c, out_c = 2, 4, 8
    D = H = W = 8

    key = jax.random.PRNGKey(0)
    kx, kp = jax.random.split(key)
    x = jax.random.normal(kx, (N, in_c, D, H, W), jnp.float32)
    params = make_params(kp, in_c, out_c, (D, H, W))

    y = attention_forward(x, params)
    jax.block_until_ready(y)
    assert y.shape == (N, out_c, D, H, W), y.shape
    assert jnp.all(jnp.isfinite(y))

    y_ref = _reference(x, params["ref"])
    np.testing.assert_allclose(np.asarray(y), np.asarray(y_ref), rtol=5e-2, atol=5e-2)
    print("KERNEL_OK")
</pallas_src>

<mosaic_0001>
module attributes {stable_mosaic.version = 11 : i64} {
  func.func @kernel(%arg0: i32, %arg1: i32, %arg2: memref<1x16x16xf32, #tpu.memory_space<vmem>>, %arg3: memref<32x29xf32, #tpu.memory_space<vmem>>, %arg4: memref<8x33xf32, #tpu.memory_space<vmem>>, %arg5: memref<4x33xf32, #tpu.memory_space<vmem>>, %arg6: memref<64x32xbf16, #tpu.memory_space<vmem>>, %arg7: memref<16x64xbf16, #tpu.memory_space<vmem>>, %arg8: memref<1x64x64xf32, #tpu.memory_space<vmem>>) attributes {dimension_semantics = [#tpu.dimension_semantics<parallel>, #tpu.dimension_semantics<parallel>], iteration_bounds = array<i64: 1, 2>, scalar_prefetch = 0 : i64, scratch_operands = 0 : i64, tpu.core_type = #tpu.core_type<tc>, window_params = [{transform_indices = @transform_0, window_bounds = array<i64: 1, 16, 16>}, {pipeline_mode = #tpu.pipeline_mode<synchronous>, transform_indices = @transform_1, window_bounds = array<i64: 32, 29>}, {pipeline_mode = #tpu.pipeline_mode<synchronous>, transform_indices = @transform_2, window_bounds = array<i64: 8, 33>}, {pipeline_mode = #tpu.pipeline_mode<synchronous>, transform_indices = @transform_3, window_bounds = array<i64: 4, 33>}, {pipeline_mode = #tpu.pipeline_mode<synchronous>, transform_indices = @transform_4, window_bounds = array<i64: 64, 32>}, {transform_indices = @transform_5, window_bounds = array<i64: 16, 64>}, {transform_indices = @transform_6, window_bounds = array<i64: 1, 64, 64>}]} {
    %c0 = arith.constant 0 : index
    %c0_0 = arith.constant 0 : index
    %c0_1 = arith.constant 0 : index
    %0 = vector.load %arg2[%c0, %c0_0, %c0_1] : memref<1x16x16xf32, #tpu.memory_space<vmem>>, vector<1x16x16xf32>
    %1 = vector.shape_cast %0 : vector<1x16x16xf32> to vector<16x16xf32>
    %2 = arith.truncf %1 : vector<16x16xf32> to vector<16x16xbf16>
    %c0_2 = arith.constant 0 : index
    %c0_3 = arith.constant 0 : index
    %3 = vector.load %arg3[%c0_2, %c0_3] : memref<32x29xf32, #tpu.memory_space<vmem>>, vector<32x29xf32>
    %4 = vector.extract_strided_slice %3 {offsets = [0, 0], sizes = [32, 16], strides = [1, 1]} : vector<32x29xf32> to vector<32x16xf32>
    %5 = arith.truncf %4 : vector<32x16xf32> to vector<32x16xbf16>
    %6 = vector.extract_strided_slice %3 {offsets = [0, 16], sizes = [32, 8], strides = [1, 1]} : vector<32x29xf32> to vector<32x8xf32>
    %7 = vector.extract_strided_slice %3 {offsets = [0, 24], sizes = [32, 4], strides = [1, 1]} : vector<32x29xf32> to vector<32x4xf32>
    %8 = vector.extract_strided_slice %3 {offsets = [0, 28], sizes = [32, 1], strides = [1, 1]} : vector<32x29xf32> to vector<32x1xf32>
    %c0_4 = arith.constant 0 : index
    %c0_5 = arith.constant 0 : index
    %9 = vector.load %arg4[%c0_4, %c0_5] : memref<8x33xf32, #tpu.memory_space<vmem>>, vector<8x33xf32>
    %10 = vector.extract_strided_slice %9 {offsets = [0, 0], sizes = [8, 32], strides = [1, 1]} : vector<8x33xf32> to vector<8x32xf32>
    %11 = vector.extract_strided_slice %9 {offsets = [0, 32], sizes = [8, 1], strides = [1, 1]} : vector<8x33xf32> to vector<8x1xf32>
    %c0_6 = arith.constant 0 : index
    %c0_7 = arith.constant 0 : index
    %12 = vector.load %arg5[%c0_6, %c0_7] : memref<4x33xf32, #tpu.memory_space<vmem>>, vector<4x33xf32>
    %13 = vector.extract_strided_slice %12 {offsets = [0, 0], sizes = [4, 32], strides = [1, 1]} : vector<4x33xf32> to vector<4x32xf32>
    %14 = vector.extract_strided_slice %12 {offsets = [0, 32], sizes = [1, 1], strides = [1, 1]} : vector<4x33xf32> to vector<1x1xf32>
    %cst = arith.constant dense<0.000000e+00> : vector<32x16xf32>
    %15 = tpu.matmul %5, %2, %cst {dimension_numbers = #tpu.dot_dimension_numbers<[1], [0], [0], [1], [0, 0, 1, 1], [], []>} : vector<32x16xbf16>, vector<16x16xbf16>, vector<32x16xf32> -> vector<32x16xf32>
    %16 = vector.broadcast %8 : vector<32x1xf32> to vector<32x16xf32>
    %17 = arith.addf %15, %16 : vector<32x16xf32>
    %cst_8 = arith.constant 0.000000e+00 : f32
    %18 = vector.broadcast %cst_8 : f32 to vector<32x16xf32>
    %19 = arith.maximumf %17, %18 : vector<32x16xf32>
    %cst_9 = arith.constant dense<0.000000e+00> : vector<32xf32>
    %20 = vector.multi_reduction <add>, %19, %cst_9 [1] : vector<32x16xf32> to vector<32xf32>
    %21 = vector.shape_cast %20 : vector<32xf32> to vector<32x1xf32>
    %cst_10 = arith.constant 1.600000e+01 : f32
    %22 = vector.broadcast %cst_10 : f32 to vector<32x1xf32>
    %23 = arith.divf %21, %22 : vector<32x1xf32>
    %cst_11 = arith.constant dense<0.000000e+00> : vector<8x1xf32>
    %24 = tpu.matmul %10, %23, %cst_11 {dimension_numbers = #tpu.dot_dimension_numbers<[1], [0], [0], [1], [0, 0, 1, 1], [], []>} : vector<8x32xf32>, vector<32x1xf32>, vector<8x1xf32> -> vector<8x1xf32>
    %25 = arith.addf %24, %11 : vector<8x1xf32>
    %26 = arith.negf %25 : vector<8x1xf32>
    %27 = math.exp %26 : vector<8x1xf32>
    %cst_12 = arith.constant 1.000000e+00 : f32
    %28 = vector.broadcast %cst_12 : f32 to vector<8x1xf32>
    %29 = arith.addf %28, %27 : vector<8x1xf32>
    %30 = arith.divf %28, %29 : vector<8x1xf32>
    %cst_13 = arith.constant dense<0.000000e+00> : vector<32x1xf32>
    %31 = tpu.matmul %6, %30, %cst_13 {dimension_numbers = #tpu.dot_dimension_numbers<[1], [0], [0], [1], [0, 0, 1, 1], [], []>} : vector<32x8xf32>, vector<8x1xf32>, vector<32x1xf32> -> vector<32x1xf32>
    %cst_14 = arith.constant dense<0.000000e+00> : vector<4x16xf32>
    %32 = tpu.matmul %13, %19, %cst_14 {dimension_numbers = #tpu.dot_dimension_numbers<[1], [0], [0], [1], [0, 0, 1, 1], [], []>} : vector<4x32xf32>, vector<32x16xf32>, vector<4x16xf32> -> vector<4x16xf32>
    %33 = vector.broadcast %14 : vector<1x1xf32> to vector<4x16xf32>
    %34 = arith.addf %32, %33 : vector<4x16xf32>
    %35 = arith.negf %34 : vector<4x16xf32>
    %36 = math.exp %35 : vector<4x16xf32>
    %cst_15 = arith.constant 1.000000e+00 : f32
    %37 = vector.broadcast %cst_15 : f32 to vector<4x16xf32>
    %38 = arith.addf %37, %36 : vector<4x16xf32>
    %39 = arith.divf %37, %38 : vector<4x16xf32>
    %cst_16 = arith.constant dense<0.000000e+00> : vector<32x16xf32>
    %40 = tpu.matmul %7, %39, %cst_16 {dimension_numbers = #tpu.dot_dimension_numbers<[1], [0], [0], [1], [0, 0, 1, 1], [], []>} : vector<32x4xf32>, vector<4x16xf32>, vector<32x16xf32> -> vector<32x16xf32>
    %41 = vector.broadcast %31 : vector<32x1xf32> to vector<32x16xf32>
    %42 = arith.mulf %19, %41 : vector<32x16xf32>
    %43 = arith.mulf %42, %40 : vector<32x16xf32>
    %44 = arith.truncf %43 : vector<32x16xf32> to vector<32x16xbf16>
    %c0_17 = arith.constant 0 : index
    %c0_18 = arith.constant 0 : index
    %45 = vector.load %arg6[%c0_17, %c0_18] : memref<64x32xbf16, #tpu.memory_space<vmem>>, vector<64x32xbf16>
    %cst_19 = arith.constant dense<0.000000e+00> : vector<64x16xf32>
    %46 = tpu.matmul %45, %44, %cst_19 {dimension_numbers = #tpu.dot_dimension_numbers<[1], [0], [0], [1], [0, 0, 1, 1], [], []>} : vector<64x32xbf16>, vector<32x16xbf16>, vector<64x16xf32> -> vector<64x16xf32>
    %47 = arith.truncf %46 : vector<64x16xf32> to vector<64x16xbf16>
    %c0_20 = arith.constant 0 : index
    %c0_21 = arith.constant 0 : index
    %48 = vector.load %arg7[%c0_20, %c0_21] : memref<16x64xbf16, #tpu.memory_space<vmem>>, vector<16x64xbf16>
    %cst_22 = arith.constant dense<0.000000e+00> : vector<64x64xf32>
    %49 = tpu.matmul %47, %48, %cst_22 {dimension_numbers = #tpu.dot_dimension_numbers<[1], [0], [0], [1], [0, 0, 1, 1], [], []>} : vector<64x16xbf16>, vector<16x64xbf16>, vector<64x64xf32> -> vector<64x64xf32>
    %c0_23 = arith.constant 0 : index
    %c0_24 = arith.constant 0 : index
    %c0_25 = arith.constant 0 : index
    %50 = vector.load %arg8[%c0_23, %c0_24, %c0_25] : memref<1x64x64xf32, #tpu.memory_space<vmem>>, vector<1x64x64xf32>
    %51 = vector.shape_cast %50 : vector<1x64x64xf32> to vector<64x64xf32>
    %52 = vector.shape_cast %49 : vector<64x64xf32> to vector<1x64x64xf32>
    tpu.vector_store %arg8[%c0_23, %c0_24, %c0_25], %52 {strides = array<i32>} : memref<1x64x64xf32, #tpu.memory_space<vmem>>, vector<1x64x64xf32>,
    return
  }
  func.func @transform_0(%arg0: i32, %arg1: i32) -> (i32, i32, i32) {
    %c0_i32 = arith.constant 0 : i32
    %c0_i32_0 = arith.constant 0 : i32
    %c0_i32_1 = arith.constant 0 : i32
    return %arg1, %c0_i32, %c0_i32_0 : i32, i32, i32
  }
  func.func @transform_1(%arg0: i32, %arg1: i32) -> (i32, i32) {
    %c0_i32 = arith.constant 0 : i32
    %c0_i32_0 = arith.constant 0 : i32
    %c0_i32_1 = arith.constant 0 : i32
    return %c0_i32, %c0_i32_0 : i32, i32
  }
  func.func @transform_2(%arg0: i32, %arg1: i32) -> (i32, i32) {
    %c0_i32 = arith.constant 0 : i32
    %c0_i32_0 = arith.constant 0 : i32
    %c0_i32_1 = arith.constant 0 : i32
    return %c0_i32, %c0_i32_0 : i32, i32
  }
  func.func @transform_3(%arg0: i32, %arg1: i32) -> (i32, i32) {
    %c0_i32 = arith.constant 0 : i32
    %c0_i32_0 = arith.constant 0 : i32
    %c0_i32_1 = arith.constant 0 : i32
    return %c0_i32, %c0_i32_0 : i32, i32
  }
  func.func @transform_4(%arg0: i32, %arg1: i32) -> (i32, i32) {
    %c0_i32 = arith.constant 0 : i32
    %c0_i32_0 = arith.constant 0 : i32
    %c0_i32_1 = arith.constant 0 : i32
    return %c0_i32, %c0_i32_0 : i32, i32
  }
  func.func @transform_5(%arg0: i32, %arg1: i32) -> (i32, i32) {
    %c0_i32 = arith.constant 0 : i32
    %c0_i32_0 = arith.constant 0 : i32
    return %c0_i32, %arg0 : i32, i32
  }
  func.func @transform_6(%arg0: i32, %arg1: i32) -> (i32, i32, i32) {
    %c0_i32 = arith.constant 0 : i32
    %c0_i32_0 = arith.constant 0 : i32
    return %arg1, %c0_i32, %arg0 : i32, i32, i32
  }
}

</mosaic_0001>

<bundles_post_ra>
// kernel: tpu_custom_call.1
= control target key start
LH: loop header
LB: loop body
LE: loop exit
PB: predicated region body
PF: predicated region fallthrough
CT: control target
= control target key end

     0   :  { %11 = vsyncpa [#allocation3], 0  ;;  %s1459_s0 = inlined_call_operand.vmem [shape: f32[2,16,16], index: 0, kind: input, shape index: {}]   ;;  %s1460_s1 = inlined_call_operand.hbm [shape: f32[32,29], index: 1, kind: input, shape index: {}]   ;;  %s1461_s2 = inlined_call_operand.vmem [shape: f32[8,33], index: 2, kind: input, shape index: {}]   ;;  %s1462_s3 = inlined_call_operand.hbm [shape: f32[4,33], index: 3, kind: input, shape index: {}]   ;;  %s1463_s4 = inlined_call_operand.vmem [shape: bf16[64,32], index: 4, kind: input, shape index: {}]   ;;  %s1464_s5 = inlined_call_operand.vmem [shape: bf16[16,64], index: 5, kind: input, shape index: {}]   ;;  %s1465_s6 = inlined_call_operand.hbm [shape: f32[2,64,64], index: 6, kind: output, shape index: {}]  }
   0x1   :  { %12 = vsyncpa [#allocation6], 0 }
   0x2   :  { %13 = vsyncpa [#allocation4], 0 }
   0x3   :  { %15 = vsyncpa [#allocation4 + $0x1], 0  ;;  %s1240_s21 = smov 0   ;;  %s1242_s22 = smov 0  }
   0x4   :  { %s1244_s23 = smov 0   ;;  %s1246_s24 = smov 0  }
   0x5   :  { %s1248_s25 = smov 0   ;;  %s1250_s26 = smov 0  }
   0x6 LB: > { %s874_s27 = sadd.s32 4294967295, %s1191_s26   ;;  %s875_s28 = sadd.s32 4294967294, %s1191_s26   ;;  %s1191_s26 = sphi %s1250_s26, %s21_s26   ;;  %s1187_s25 = sphi %s1248_s25, %s1474_s25   ;;  %s1183_s24 = sphi %s1246_s24, %s1473_s24   ;;  %s1179_s23 = sphi %s1244_s23, %s1472_s23   ;;  %s1175_s22 = sphi %s1242_s22, %s1471_s22   ;;  %s1171_s21 = sphi %s1240_s21, %s1470_s21  }
   0x7   : > { %s30_s29 = sadd.s32 1, %s1187_s25  ;;  %s178_s30 = sadd.s32 1, %s1179_s23 }
   0x8   : > { %p31_p0 = scmp.ge.s32.totalorder %s30_s29, 2  ;;  %p188_p1 = scmp.ne.s32.totalorder %s1179_s23, %s1175_s22 }
   0x9   : > { %p189_p2 = scmp.eq.s32.totalorder %s874_s27, 1  ;;  %p194_p3 = scmp.ne.s32.totalorder %s1175_s22, %s1171_s21 }
   0xa   : > { %s1476_s29 = smov (%p31_p0, %s30_s29), 0  ;;  %p195_p5 = scmp.eq.s32.totalorder %s875_s28, 1 }
   0xb   : > { %p1280_p4 = por %p189_p2, %p188_p1  ;;  %s173_s8 = ssub.s32 %s1187_s25, %s1476_s29 }
   0xc   : > { %p876_p6 = scmp.ge.s32.totalorder %s1191_s26, 1  ;;  %p176_p7 = scmp.eq.s32.totalorder %s173_s8, 0 }
   0xd   : > { %p1287_p8 = por %p195_p5, %p194_p3  ;;  %p202_p9 = scmp.lt.s32.totalorder %s1191_s26, 3 }
   0xe   : > { %s1293_s10 = scalar_select %p176_p7, %s1179_s23, %s178_s30  }
   0xf   : > { %p1295_p10 = pnand %p876_p6, %p202_p9  ;;  %p1299_p11 = scmp.eq.s32.totalorder %s874_s27, 0 }
  0x10   : > { %s213_s15 = sshll.u32 %s1460_s1, 4  ;;  %s1193_s16 = smov [#allocation2]   ;;  %s214_s15 = int_to_ptr.hbm [resolvable:$true] %s213_s15 }
  0x11   : > { %p954_p12 = pneg %p1295_p10  ;;  %s215_s17 = sshll.u32 %s1193_s16, 4  ;;  %s216_s17 = int_to_ptr.vmem [resolvable:$true] %s215_s17 }
  0x12   : > { %s231_s20 = sshll.u32 %s1462_s3, 4  ;;  %s1194_s27 = smov 128   ;;  %s232_s20 = int_to_ptr.hbm [resolvable:$true] %s231_s20 }
  0x13   : > { %p955_p13 = pnand %p1299_p11, %p954_p12  ;;  %s1195_s28 = smov 8  }
  0x14   : > { %s1196_s30 = smov [#allocation5]   ;;  %264 = sbr.rel (%p1295_p10) target bundleno = 1095 (0x447), region = 44 }
  0x15   : > { %957 = dma.hbm_to_vmem [thread:$0]  (!%p955_p13), %s214_s15, 512, %s216_s17, [#allocation3], %s1194_s27, %s1194_s27, %s1195_s28  }
  0x16   : > { %s233_s8 = sshll.u32 %s1196_s30, 4  ;;  %s234_s8 = int_to_ptr.vmem [resolvable:$true] %s233_s8 }
  0x17   : > { %960 = dma.hbm_to_vmem [thread:$0]  (!%p955_p13), %s232_s20, 64, %s234_s8, [#allocation6]  }
  0x19   : > { %1158 = dma.done.wait (%p1299_p11), [#allocation3], 512  }
  0x1a   : > { %1160 = vsyncadd (%p1299_p11), [#allocation3], 4294966784 }
  0x1b   : > { %1162 = dma.done.wait (%p1299_p11), [#allocation6], 64  }
  0x1c   : > { %1164 = vsyncadd (%p1299_p11), [#allocation6], 4294967232  ;;  %p304_p0 = scmp.lt.s32.totalorder %s1183_s24, 1  ;;  %v1197_v0 = vmov 28   ;;  %v1328_v3 = vld [vmem:[#allocation2] sm:$0xff]  ;;  %v1330_v5 = vld [vmem:[#allocation2 + $0x8] sm:$0xff] }
  0x1d   : > { %1031 = vset.pattern.permute.xlu1 %v1197_v0  ;;  %1030 = vset.pattern.permute.xlu0 %v1197_v0  ;;  %v1332_v6 = vld [vmem:[#allocation2 + $0x18] sm:$0xff]  ;;  %v321_v7 = vpack.c.bf16 %v1330_v5, %v1328_v3  ;;  %vm345_vm0 = vcmask 130048   ;;  %v1339_v8 = vld [vmem:[#allocation2 + $0x10] sm:$0xff]  ;;  %s1198_s12 = smov 112   ;;  %v1199_v30 = vmov 16.0   ;;  %s1200_s17 = smov 96  }
  0x1e   : > { %s305_s11 = scalar_select %p304_p0, %s1183_s24, 1  ;;  %332 = vperm.xlu1 %1031, %v1330_v5   ;;  %342 = vperm.xlu0 %1030, %v1332_v6   ;;  %v322_v9 = vpack.c.bf16 %v1332_v6, %v1339_v8  ;;  %1035 = vrcp.f32 %v1199_v30  ;;  %v324_v34 = vld [vmem:[#allocation5] sm:$0xf]  ;;  %vm402_vm2 = vcmask 261120   ;;  %vm452_vm7 = vcmask 64512  }
  0x1f   : > { %v323_v37 = vld [vmem:[%s1461_s2] sm:$0xff]  ;;  %s1201_s20 = smov 104   ;;  %vm554_vm12 = vcmask 1043456   ;;  %vm545_vm13 = vcmask 31744   ;;  %s301_s18 = sand.u32 1, %s1175_s22   ;;  %vm739_vm14 = vcmask 523264  }
  0x20   : > { %s935_s13 = sshll.u32 %s305_s11, 4  ;;  %s884_s19 = sshll.u32 %s301_s18, 6 }
  0x21   : > { %s308_s16 = scalar_lea.vmem %s1459_s0, %s935_s13  ;;  %s749_s14 = scalar_lea.sflag [#allocation4], %s301_s18 }
  0x22   : > { %v314_v1 = vld [vmem:[%s308_s16] sm:$0xff]  ;;  %v315_v2 = vld [vmem:[%s308_s16 + $0x8] sm:$0xff] }
  0x23   : > { %v316_v4 = vpack.c.bf16 %v315_v2, %v314_v1 }
  0x24   : > { %v1036_v31 = vpop.eup %1035 }
  0x25   : > { %359 = vmatpush.bf16.msra.mxu0 %v316_v4  ;;  %v388_v32 = vmul.f32 16.0, %v1036_v31  ;;  %vm392_vm1 = vweird.f32 %v1036_v31 }
  0x26   : > { %327 = vperm.xlu1 %1031, %v1328_v3   ;;  %337 = vperm.xlu0 %1030, %v1339_v8  }
  0x27   : > { %v389_v33 = vsub.f32 1.0, %v388_v32 }
  0x28   : > { %887 = vmatmul.msk.bf16.vlgmr.msra.gmra.mxu0 %vm345_vm0, %v321_v7 }
  0x29   : > { %v390_v35 = vmul.f32 %v1036_v31, %v389_v33 }
  0x2b   : > { %v391_v36 = vadd.f32 %v1036_v31, %v390_v35 }
  0x2d   : > { %v393_v38 = vsel %vm392_vm1, %v1036_v31, %v391_v36 }
  0x38   : > { %888 = vmatmul.msk.bf16.gmra.mxu0 %vm345_vm0, %v322_v9 }
  0x90   : > { %v333_v10 = vpop.permute.xlu1 %332  ;;  %v343_v20 = vpop.permute.xlu0 %342 }
  0x98   : > { %v328_v11 = vpop.permute.xlu1 %327  ;;  %v338_v24 = vpop.permute.xlu0 %337 }
  0xa5   : > { %v361_v12 = vpop.f32.mrf.mxu0 }
  0xa6   : > { %v362_v13 = vadd.f32 %v361_v12, %v328_v11 }
  0xa8   : > { %v1346_v14 = vmax.f32 %v362_v13, 0.0 }
  0xaa   : > { %v375_v15 = vsel %vm345_vm0, %v1346_v14, 0.0 }
  0xab   : > { %376 = vadd.xlane.f32.xlu1 %v375_v15 }
  0xad   : > { %v363_v16 = vpop.f32.mrf.mxu0 }
  0xae   : > { %v364_v17 = vadd.f32 %v363_v16, %v333_v10 }
  0xb0   : > { %v1350_v18 = vmax.f32 %v364_v17, 0.0 }
  0xb2   : > { %v378_v19 = vsel %vm345_vm0, %v1350_v18, 0.0 }
  0xb3   : > { %379 = vadd.xlane.f32.xlu0 %v378_v19 }
  0xb5   : > { %v366_v21 = vpop.f32.mrf.mxu0 }
  0xb6   : > { %v367_v26 = vadd.f32 %v366_v21, %v338_v24 }
  0xb8   : > { %v1358_v28 = vmax.f32 %v367_v26, 0.0 }
  0xba   : > { %v381_v29 = vsel %vm345_vm0, %v1358_v28, 0.0 }
  0xbd   : > { %v368_v22 = vpop.f32.mrf.mxu0 }
  0xbe   : > { %v369_v23 = vadd.f32 %v368_v22, %v343_v20 }
  0xc0   : > { %v1354_v25 = vmax.f32 %v369_v23, 0.0 }
  0xc2   : > { %v384_v27 = vsel %vm345_vm0, %v1354_v25, 0.0 }
  0xc3   : > { %385 = vadd.xlane.f32.xlu2 %v384_v27 }
  0xc4   : > { %450 = vrot.lane.b32.xlu1 %v1332_v6, %s1198_s12 }
  0xc7   : > { %448 = vrot.lane.b32.xlu0 %v1339_v8, %s1198_s12 }
  0xcb   : > { %382 = vadd.xlane.f32.xlu2 %v381_v29 }
  0xcf   : > { %541 = vrot.lane.b32.xlu0 %v1339_v8, %s1201_s20 }
  0xe3   : > { %491 = vrot.lane.b32.xlu2 %v324_v34, %s1200_s17 }
  0xeb   : > { %399 = vrot.lane.b32.xlu2 %v323_v37, %s1200_s17  ;;  %s1125_s17 = scalar_lea.hbm %s1465_s6, 128 }
  0xf3   : > { %444 = vrot.lane.b32.xlu2 %v1328_v3, %s1198_s12 }
  0xfb   : > { %446 = vrot.lane.b32.xlu2 %v1330_v5, %s1198_s12 }
 0x103   : > { %537 = vrot.lane.b32.xlu2 %v1328_v3, %s1201_s20  ;;  %v1202_v3 = vmov 0  }
 0x104   : > { %1034 = vset.pattern.permute.xlu2 %v1202_v3  ;;  %1032 = vset.pattern.permute.xlu1 %v1202_v3 }
 0x105   : > { %1033 = vset.pattern.permute.xlu0 %v1202_v3 }
 0x10b   : > { %539 = vrot.lane.b32.xlu2 %v1330_v5, %s1201_s20 }
 0x113   : > { %543 = vrot.lane.b32.xlu2 %v1332_v6, %s1201_s20  ;;  %s303_s20 = scalar_lea.vmem [#allocation7], %s884_s19 }
 0x114   : > { %s762_s11 = sshll.u32 %s303_s20, 4  ;;  %s763_s11 = int_to_ptr.vmem [resolvable:$true] %s762_s11 }
 0x11e   : > { %v377_v44 = vpop.xlane.xlu1 %376 }
 0x11f   : > { %v394_v46 = vmul.f32 %v393_v38, %v377_v44 }
 0x126   : > { %v380_v41 = vpop.xlane.xlu0 %379 }
 0x127   : > { %v395_v45 = vmul.f32 %v393_v38, %v380_v41 }
 0x136   : > { %v386_v39 = vpop.xlane.xlu2 %385  ;;  %v451_v24 = vpop.permute.xlu1 %450 }
 0x137   : > { %v397_v40 = vmul.f32 %v393_v38, %v386_v39 }
 0x139   : > { %417 = vmatpush.msra.mxu1 %v397_v40  ;;  %v449_v22 = vpop.permute.xlu0 %448 }
 0x13e   : > { %v383_v42 = vpop.xlane.xlu2 %382 }
 0x13f   : > { %v396_v43 = vmul.f32 %v393_v38, %v383_v42 }
 0x141   : > { %418 = vmatpush.msra.mxu1 %v396_v43  ;;  %v542_v26 = vpop.permute.xlu0 %541 }
 0x143   : > { %419 = vmatpush.msra.mxu1 %v395_v45 }
 0x145   : > { %420 = vmatpush.msra.mxu1 %v394_v46 }
 0x146   : > { %889 = vmatmul.msk.f32.vlgmr.msra.gmra.mxu1 %vm402_vm2, %v323_v37  ;;  %v492_v47 = vpop.permute.xlu2 %491 }
 0x147   : > { %510 = vmatpush.msrb.mxu1 %v1354_v25  ;;  %942 = vpush %v492_v47 }
 0x149   : > { %511 = vmatpush.msrb.mxu1 %v1358_v28 }
 0x14b   : > { %512 = vmatpush.msrb.mxu1 %v1350_v18 }
 0x14d   : > { %513 = vmatpush.msrb.mxu1 %v1346_v14 }
 0x14e   : > { %895 = vmatmul.msk.f32.vlgmr.msrb.gmra.mxu1 %vm402_vm2, %v324_v34  ;;  %v400_v48 = vpop.permute.xlu2 %399 }
 0x156   : > { %v445_v59 = vpop.permute.xlu2 %444 }
 0x15e   : > { %v447_v9 = vpop.permute.xlu2 %446 }
 0x166   : > { %v538_v20 = vpop.permute.xlu2 %537 }
 0x16e   : > { %v540_v23 = vpop.permute.xlu2 %539 }
 0x176   : > { %v544_v27 = vpop.permute.xlu2 %543 }
 0x178   : > { %s943_s27 = spop %942 }
 0x179   : > { %v494_v52 = vstv %s943_s27  ;;  %s941_s27 = sshll.u32 %s1183_s24, 6 }
 0x17a   : > { %s761_s8 = scalar_lea.hbm %s1465_s6, %s941_s27 }
 0x17b   : > { %s764_s13 = sshll.u32 %s761_s8, 4  ;;  %s765_s13 = int_to_ptr.hbm [resolvable:$true] %s764_s13 }
 0x17c   : > { %s1119_s15 = sshra.s32 %s765_s13, 4  ;;  %s1120_s15 = int_to_ptr.hbm [resolvable:$true] %s1119_s15 }
 0x17d   : > { %s1121_s16 = scalar_lea.hbm %s1120_s15, 64  ;;  %p1126_p5 = scmp.lt.s32.totalorder %s1120_s15, %s1465_s6 }
 0x17e   : > { %p1122_p1 = scmp.ne.s32.totalorder %s1120_s15, %s1121_s16  ;;  %p1127_p6 = scmp.lt.s32.totalorder %s1125_s17, %s1121_s16 }
 0x180   : > { %p1123_p2 = pnand %p1122_p1, %p1280_p4  ;;  %p1128_p7 = por %p1127_p6, %p1126_p5 }
 0x182   : > { %p1124_p3 = pneg %p1123_p2 }
 0x184   : > { %p1129_p9 = pnand %p1128_p7, %p1124_p3 }
 0x1c3   : > { %v422_v49 = vpop.f32.mrf.mxu1 }
 0x1c4   : > { %v423_v50 = vadd.f32 %v422_v49, %v400_v48 }
 0x1c6   : > { %v890_v51 = vmul.f32 -1.442695, %v423_v50 }
 0x1c8   : > { %1037 = vpow2.f32 %v890_v51  ;;  %v940_v51 = vld [vmem:[%s1464_s5] sm:$0xff] }
 0x1c9   : > { %717 = vmatpush.bf16.msra.mxu2 %v940_v51 }
 0x1cb   : > { %v515_v53 = vpop.f32.mrf.mxu1 }
 0x1cc   : > { %v516_v54 = vadd.f32 %v515_v53, %v494_v52 }
 0x1ce   : > { %v1038_v55 = vpop.eup %1037  ;;  %v896_v56 = vmul.f32 -1.442695, %v516_v54 }
 0x1cf   : > { %v428_v57 = vadd.f32 1.0, %v1038_v55 }
 0x1d0   : > { %1039 = vpow2.f32 %v896_v56 }
 0x1d1   : > { %1041 = vrcp.f32 %v428_v57  ;;  %v440_v0 = vand.u32 2147483648, %v428_v57  ;;  %v438_v2 = vand.u32 2147483647, %v428_v57  ;;  %vm434_vm4 = vweird.f32 %v428_v57 }
 0x1d3   : > { %v441_v6 = vor.u32 1.1754944e-38, %v440_v0  ;;  %vm439_vm6 = vcmp.eq.f32.partialorder %v438_v2, 8.507059e+37 }
 0x1d6   : > { %v1040_v58 = vpop.eup %1039 }
 0x1d7   : > { %v1042_v60 = vpop.eup %1041  ;;  %v521_v61 = vadd.f32 1.0, %v1040_v58 }
 0x1d8   : > { %v430_v62 = vmul.f32 %v1042_v60, %v428_v57  ;;  %vm435_vm3 = vweird.f32 %v1042_v60 }
 0x1d9   : > { %1043 = vrcp.f32 %v521_v61  ;;  %vm436_vm5 = vmor %vm434_vm4, %vm435_vm3  ;;  %v533_v11 = vand.u32 2147483648, %v521_v61  ;;  %vm527_vm8 = vweird.f32 %v521_v61  ;;  %v531_v13 = vand.u32 2147483647, %v521_v61 }
 0x1da   : > { %v431_v63 = vsub.f32 1.0, %v430_v62 }
 0x1db   : > { %v534_v16 = vor.u32 1.1754944e-38, %v533_v11  ;;  %vm532_vm11 = vcmp.eq.f32.partialorder %v531_v13, 8.507059e+37 }
 0x1dc   : > { %v432_v1 = vmul.f32 %v1042_v60, %v431_v63 }
 0x1de   : > { %v433_v4 = vadd.f32 %v1042_v60, %v432_v1 }
 0x1df   : > { %v1044_v5 = vpop.eup %1043 }
 0x1e0   : > { %v523_v7 = vmul.f32 %v1044_v5, %v521_v61  ;;  %v437_v8 = vsel %vm436_vm5, %v1042_v60, %v433_v4  ;;  %vm528_vm9 = vweird.f32 %v1044_v5 }
 0x1e1   : > { %v442_v10 = vsel %vm439_vm6, %v441_v6, %v437_v8  ;;  %vm529_vm10 = vmor %vm527_vm8, %vm528_vm9 }
 0x1e2   : > { %v524_v12 = vsub.f32 1.0, %v523_v7  ;;  %476 = vmatpush.msrb.mxu0 %v442_v10 }
 0x1e3   : > { %891 = vmatmul.msk.f32.vlgmr.msrb.gmra.mxu0 %vm452_vm7, %v445_v59 }
 0x1e4   : > { %v525_v15 = vmul.f32 %v1044_v5, %v524_v12 }
 0x1e6   : > { %v526_v17 = vadd.f32 %v1044_v5, %v525_v15 }
 0x1e8   : > { %v530_v19 = vsel %vm529_vm10, %v1044_v5, %v526_v17 }
 0x1e9   : > { %v535_v21 = vsel %vm532_vm11, %v534_v16, %v530_v19 }
 0x1ea   : > { %897 = vmatpush.msk.msra.mxu1 %vm554_vm12, %v535_v21 }
 0x1eb   : > { %892 = vmatmul.msk.f32.gmra.mxu0 %vm452_vm7, %v447_v9  ;;  %898 = vmatmul.msk.f32.vlgmr.msra.gmra.mxu1 %vm545_vm13, %v538_v20 }
 0x1f3   : > { %893 = vmatmul.msk.f32.gmra.mxu0 %vm452_vm7, %v449_v22  ;;  %899 = vmatmul.msk.f32.gmra.mxu1 %vm545_vm13, %v540_v23 }
 0x1fb   : > { %894 = vmatmul.msk.f32.gmra.mxu0 %vm452_vm7, %v451_v24  ;;  %900 = vmatmul.msk.f32.gmra.mxu1 %vm545_vm13, %v542_v26 }
 0x203   : > { %901 = vmatmul.msk.f32.gmra.mxu1 %vm545_vm13, %v544_v27 }
 0x260   : > { %v478_v29 = vpop.f32.mrf.mxu0 }
 0x261   : > { %589 = vperm.xlu2 %1034, %v478_v29  }
 0x268   : > { %v481_v30 = vpop.f32.mrf.mxu0  ;;  %v575_v33 = vpop.f32.mrf.mxu1 }
 0x270   : > { %v484_v31 = vpop.f32.mrf.mxu0  ;;  %v578_v34 = vpop.f32.mrf.mxu1 }
 0x271   : > { %599 = vperm.xlu1 %1032, %v484_v31  }
 0x278   : > { %v487_v32 = vpop.f32.mrf.mxu0  ;;  %v581_v35 = vpop.f32.mrf.mxu1 }
 0x279   : > { %594 = vperm.xlu1 %1032, %v481_v30   ;;  %604 = vperm.xlu0 %1033, %v487_v32  }
 0x280   : > { %v584_v39 = vpop.f32.mrf.mxu1 }
 0x2bb   : > { %v590_v37 = vpop.permute.xlu2 %589 }
 0x2bc   : > { %v607_v44 = vmul.f32 %v590_v37, %v1346_v14  ;;  %v938_v14 = vld [vmem:[%s1463_s4 + $0x10] sm:$0xff] }
 0x2be   : > { %v611_v49 = vmul.f32 %v607_v44, %v575_v33 }
 0x2e3   : > { %v600_v36 = vpop.permute.xlu1 %599 }
 0x2e4   : > { %v609_v38 = vmul.f32 %v600_v36, %v1358_v28  ;;  %v936_v28 = vld [vmem:[%s1463_s4] sm:$0xff] }
 0x2e6   : > { %v613_v45 = vmul.f32 %v609_v38, %v581_v35 }
 0x2eb   : > { %v605_v40 = vpop.permute.xlu0 %604  ;;  %v595_v41 = vpop.permute.xlu1 %594 }
 0x2ec   : > { %v610_v42 = vmul.f32 %v605_v40, %v1354_v25  ;;  %v608_v43 = vmul.f32 %v595_v41, %v1350_v18  ;;  %v937_v18 = vld [vmem:[%s1463_s4 + $0x8] sm:$0xff]  ;;  %v939_v25 = vld [vmem:[%s1463_s4 + $0x18] sm:$0xff] }
 0x2ee   : > { %v614_v46 = vmul.f32 %v610_v42, %v584_v39  ;;  %v612_v47 = vmul.f32 %v608_v43, %v578_v34 }
 0x2f0   : > { %v616_v48 = vpack.c.bf16 %v614_v46, %v613_v45  ;;  %v615_v50 = vpack.c.bf16 %v612_v47, %v611_v49 }
 0x2f2   : > { %663 = vmatpush.bf16.msra.mxu3 %v616_v48 }
 0x2f6   : > { %664 = vmatpush.bf16.msra.mxu3 %v615_v50 }
 0x2f9   : > { %918 = vmatmul.msk.bf16.vlgmr.msra.gmra.mxu3 %vm402_vm2, %v936_v28 }
 0x309   : > { %919 = vmatmul.msk.bf16.gmra.mxu3 %vm402_vm2, %v937_v18 }
 0x319   : > { %920 = vmatmul.msk.bf16.gmra.mxu3 %vm402_vm2, %v938_v14 }
 0x329   : > { %921 = vmatmul.msk.bf16.gmra.mxu3 %vm402_vm2, %v939_v25 }
 0x37c   : > { %v666_v52 = vpop.f32.mrf.mxu3 }
 0x384   : > { %v668_v53 = vpop.f32.mrf.mxu3 }
 0x385   : > { %v686_v54 = vpack.c.bf16 %v668_v53, %v666_v52 }
 0x387   : > { %926 = vmatmul.msk.bf16.vlgmr.msra.gmra.mxu2 %vm345_vm0, %v686_v54 }
 0x38c   : > { %v671_v55 = vpop.f32.mrf.mxu3 }
 0x394   : > { %v673_v56 = vpop.f32.mrf.mxu3 }
 0x395   : > { %v687_v57 = vpack.c.bf16 %v673_v56, %v671_v55 }
 0x397   : > { %927 = vmatmul.msk.bf16.gmra.mxu2 %vm345_vm0, %v687_v57 }
 0x39c   : > { %v676_v58 = vpop.f32.mrf.mxu3 }
 0x3a4   : > { %v678_v59 = vpop.f32.mrf.mxu3 }
 0x3a5   : > { %v688_v60 = vpack.c.bf16 %v678_v59, %v676_v58 }
 0x3a7   : > { %928 = vmatmul.msk.bf16.gmra.mxu2 %vm345_vm0, %v688_v60 }
 0x3ac   : > { %v681_v61 = vpop.f32.mrf.mxu3 }
 0x3b4   : > { %v683_v62 = vpop.f32.mrf.mxu3 }
 0x3b5   : > { %v689_v63 = vpack.c.bf16 %v683_v62, %v681_v61 }
 0x3b7   : > { %929 = vmatmul.msk.bf16.gmra.mxu2 %vm345_vm0, %v689_v63 }
 0x40a   : > { %v719_v0 = vpop.f32.mrf.mxu2 }
 0x40b   : > { %740 = vst.msk [vmem:[%s303_s20] sm:$0xff] %vm739_vm14, %v719_v0 }
 0x412   : > { %v721_v1 = vpop.f32.mrf.mxu2 }
 0x413   : > { %741 = vst.msk [vmem:[%s303_s20 + $0x8] sm:$0xff] %vm739_vm14, %v721_v1 }
 0x41a   : > { %v724_v2 = vpop.f32.mrf.mxu2 }
 0x41b   : > { %742 = vst.msk [vmem:[%s303_s20 + $0x10] sm:$0xff] %vm739_vm14, %v724_v2 }
 0x422   : > { %v726_v3 = vpop.f32.mrf.mxu2 }
 0x423   : > { %743 = vst.msk [vmem:[%s303_s20 + $0x18] sm:$0xff] %vm739_vm14, %v726_v3 }
 0x42a   : > { %v729_v4 = vpop.f32.mrf.mxu2 }
 0x42b   : > { %744 = vst.msk [vmem:[%s303_s20 + $0x20] sm:$0xff] %vm739_vm14, %v729_v4 }
 0x432   : > { %v731_v5 = vpop.f32.mrf.mxu2 }
 0x433   : > { %745 = vst.msk [vmem:[%s303_s20 + $0x28] sm:$0xff] %vm739_vm14, %v731_v5 }
 0x43a   : > { %v734_v6 = vpop.f32.mrf.mxu2 }
 0x43b   : > { %746 = vst.msk [vmem:[%s303_s20 + $0x30] sm:$0xff] %vm739_vm14, %v734_v6 }
 0x442   : > { %v736_v7 = vpop.f32.mrf.mxu2 }
 0x443   : > { %747 = vst.msk [vmem:[%s303_s20 + $0x38] sm:$0xff] %vm739_vm14, %v736_v7 }
 0x444   : > { %1132 = shalt.err (!%p1129_p9)
}
 0x445   : > { %s1203_s18 = smov 128   ;;  %s1204_s20 = smov 8  }
 0x446   : > { %952 = dma.vmem_to_hbm [thread:$0]  (%p1280_p4), %s763_s11, 1024, %s765_s13, %s749_s14, %s1203_s18, %s1203_s18, %s1204_s20  }
 0x447 PF: > { %p969_p10 = scmp.ge.s32.totalorder %s1191_s26, 2  ;;  %s779_s28 = sand.u32 1, %s1171_s21  }
 0x448   : > { %s780_s30 = scalar_lea.sflag [#allocation4], %s779_s28 }
 0x449   : > { %p962_p11 = pnand %p969_p10, %p1287_p8 }
 0x44b   : > { %p963_p12 = pneg %p962_p11 }
 0x44d   : > { %1166 = dma.done.wait (%p963_p12), %s780_s30, 1024  }
 0x44e   : > { %1168 = vsyncadd (%p963_p12), %s780_s30, 4294966272  ;;  %s21_s26 = sadd.s32 1, %s1191_s26   ;;  %s1470_s21 = smov %s1175_s22 }
 0x44f   : > { %p18_p13 = scmp.ge.s32.totalorder %s21_s26, 4   ;;  %s1471_s22 = smov %s1179_s23 }
 0x450   : > { %s1472_s23 = smov %s1293_s10  ;;  %s1473_s24 = smov %s1187_s25 }
 0x451   : > { %s1474_s25 = smov %s1476_s29  ;;  %20 = sbr.rel (!%p18_p13) target bundleno = 6 (0x6), region = 91 }
 0x456   :  { %786 = vsyncpa [#allocation3], 1 }
 0x457   :  { %788 = vsyncpa [#allocation3 + $0x1], 1 }
 0x458   :  { %789 = vsyncpa [#allocation6], 1 }
 0x459   :  { %790 = vsyncpa [#allocation4], 1 }
 0x45a   :  { %792 = vsyncpa [#allocation4 + $0x1], 1 }

</bundles_post_ra>
